<compile_context>
chip_gen: v5e
topology: v5e:2x2
jax: 0.10.0
libtpu: 0.0.40
codegen_flags: <defaults>
</compile_context>

<pallas_src>
import functools

import jax
import jax.numpy as jnp
from jax import lax
from jax.experimental import pallas as pl
from jax.experimental.pallas import tpu as pltpu

LANES = 128
SUBLANES = 8
TILE_ELEMS = SUBLANES * LANES          # one f32 vreg tile = (8, 128) = 1024 elems
MAX_BLOCK_TILES = 256                  # 256 tiles * 4 KiB = 1 MiB f32 per input block


def _focal_loss_kernel(x_ref, t_ref, o_ref, *, alpha, gamma, n_elem,
                       block_tiles, needs_mask):
    """One grid step: focal loss over a (block_tiles, 8, 128) slab; writes the
    (8, 128) partial sum for this block (final reduce happens in the wrapper)."""
    x = x_ref[...].astype(jnp.float32)     # logits
    t = t_ref[...].astype(jnp.float32)     # binary targets

    # One sigmoid + one log per element:
    #   log1p(exp(-|x|)) == -log(max(p, 1-p)),  p = sigmoid(x), max(p,1-p) >= 0.5
    p = jax.nn.sigmoid(x)
    bce = jnp.maximum(x, 0.0) - x * t - jnp.log(jnp.maximum(p, 1.0 - p))

    pt = jnp.where(t == 1.0, p, 1.0 - p)
    one_minus_pt = 1.0 - pt

    g = float(gamma)
    if g == 0.0:
        focal_weight = jnp.ones_like(one_minus_pt)
    elif g.is_integer() and 1.0 <= g <= 4.0:
        # Integer gamma (default 2.0): repeated multiply, no exp/log power.
        focal_weight = one_minus_pt
        for _ in range(int(g) - 1):
            focal_weight = focal_weight * one_minus_pt
    else:
        focal_weight = one_minus_pt ** g

    alpha_weight = jnp.where(t == 1.0, alpha, 1.0 - alpha)
    focal = alpha_weight * focal_weight * bce

    if needs_mask:
        # Kill padded elements via the flat element index (no mask array in HBM).
        shape = (block_tiles, SUBLANES, LANES)
        base = pl.program_id(0) * (block_tiles * TILE_ELEMS)
        k = lax.broadcasted_iota(jnp.int32, shape, 0)
        s = lax.broadcasted_iota(jnp.int32, shape, 1)
        l = lax.broadcasted_iota(jnp.int32, shape, 2)
        idx = base + k * TILE_ELEMS + s * LANES + l
        focal = jnp.where(idx < n_elem, focal, 0.0)

    # Fold (block_tiles, 8, 128) -> (8, 128) with vector adds only.
    o_ref[0] = jnp.sum(focal, axis=0)


def focal_loss(inputs, targets, *, alpha=0.25, gamma=2.0, reduction="mean",
               max_block_tiles=MAX_BLOCK_TILES):
    """Pallas focal loss. inputs/targets: [N, 1, H, W] (any matching shape)."""
    assert inputs.shape == targets.shape
    if reduction not in ("mean", "sum"):
        # TODO(synk): 'none' reduction (per-element lane-dense output) not wired
        # up; the module default is 'mean'.
        raise NotImplementedError("reduction='none' not implemented")

    n_elem = int(inputs.size)
    n_tiles = pl.cdiv(n_elem, TILE_ELEMS)
    grid_len = pl.cdiv(n_tiles, max_block_tiles)
    block_tiles = pl.cdiv(n_tiles, grid_len)       # <= max_block_tiles
    total_tiles = grid_len * block_tiles
    pad = total_tiles * TILE_ELEMS - n_elem

    # Keep native dtype (kernel casts to f32); pad only the tail if needed.
    x = inputs.reshape(-1)
    t = targets.reshape(-1)
    if pad:
        x = jnp.pad(x, (0, pad))
        t = jnp.pad(t, (0, pad))
    x = x.reshape(total_tiles, SUBLANES, LANES)
    t = t.reshape(total_tiles, SUBLANES, LANES)

    kernel = functools.partial(
        _focal_loss_kernel, alpha=float(alpha), gamma=float(gamma),
        n_elem=n_elem, block_tiles=block_tiles, needs_mask=pad > 0)

    in_spec = pl.BlockSpec((block_tiles, SUBLANES, LANES), lambda i: (i, 0, 0))
    out_spec = pl.BlockSpec((1, SUBLANES, LANES), lambda i: (i, 0, 0))

    partials = pl.pallas_call(
        kernel,
        out_shape=jax.ShapeDtypeStruct((grid_len, SUBLANES, LANES), jnp.float32),
        grid=(grid_len,),
        in_specs=[in_spec, in_spec],
        out_specs=out_spec,
        compiler_params=pltpu.CompilerParams(
            dimension_semantics=("parallel",)),
    )(x, t)

    total = jnp.sum(partials)
    if reduction == "mean":
        return total / jnp.float32(n_elem)
    return total


def _focal_loss_ref(inputs, targets, alpha=0.25, gamma=2.0):
    x = inputs.astype(jnp.float32)
    t = targets.astype(jnp.float32)
    bce = jnp.maximum(x, 0.0) - x * t + jnp.log1p(jnp.exp(-jnp.abs(x)))
    p = jax.nn.sigmoid(x)
    pt = jnp.where(t == 1.0, p, 1.0 - p)
    fl = jnp.where(t == 1.0, alpha, 1.0 - alpha) * (1.0 - pt) ** gamma * bce
    return fl.mean()


if __name__ == "__main__":
    key = jax.random.PRNGKey(0)
    k1, k2, k3, k4 = jax.random.split(key, 4)

    # Small case (single block, padded tail).
    N, C, H, W = 2, 1, 16, 16
    logits = jax.random.normal(k1, (N, C, H, W), dtype=jnp.float32) * 2.0
    targets = (jax.random.uniform(k2, (N, C, H, W)) < 0.1).astype(jnp.float32)

    loss = focal_loss(logits, targets, alpha=0.25, gamma=2.0, reduction="mean")
    loss = jax.block_until_ready(loss)
    ref = jax.block_until_ready(_focal_loss_ref(logits, targets))
    assert jnp.allclose(loss, ref, rtol=1e-5, atol=1e-5), (loss, ref)

    # Larger case exercising a multi-block grid + in-kernel padding mask.
    N2, C2, H2, W2 = 2, 1, 383, 383
    logits2 = jax.random.normal(k3, (N2, C2, H2, W2), dtype=jnp.float32) * 2.0
    targets2 = (jax.random.uniform(k4, (N2, C2, H2, W2)) < 0.1).astype(jnp.float32)

    loss2 = focal_loss(logits2, targets2, alpha=0.25, gamma=2.0, reduction="mean")
    loss2 = jax.block_until_ready(loss2)
    ref2 = jax.block_until_ready(_focal_loss_ref(logits2, targets2))
    assert jnp.allclose(loss2, ref2, rtol=1e-4, atol=1e-5), (loss2, ref2)

    print("KERNEL_OK")
</pallas_src>

<mosaic_0001>
module attributes {stable_mosaic.version = 11 : i64} {
  func.func @_focal_loss_kernel(%arg0: i32, %arg1: memref<1x8x128xf32, #tpu.memory_space<vmem>>, %arg2: memref<1x8x128xf32, #tpu.memory_space<vmem>>, %arg3: memref<1x8x128xf32, #tpu.memory_space<vmem>>) attributes {dimension_semantics = [#tpu.dimension_semantics<parallel>], iteration_bounds = array<i64: 1>, scalar_prefetch = 0 : i64, scratch_operands = 0 : i64, tpu.core_type = #tpu.core_type<tc>, window_params = [{transform_indices = @transform_0, window_bounds = array<i64: 1, 8, 128>}, {transform_indices = @transform_1, window_bounds = array<i64: 1, 8, 128>}, {transform_indices = @transform_2, window_bounds = array<i64: 1, 8, 128>}]} {
    %c0 = arith.constant 0 : index
    %c0_0 = arith.constant 0 : index
    %c0_1 = arith.constant 0 : index
    %0 = vector.load %arg1[%c0, %c0_0, %c0_1] : memref<1x8x128xf32, #tpu.memory_space<vmem>>, vector<1x8x128xf32>
    %c0_2 = arith.constant 0 : index
    %c0_3 = arith.constant 0 : index
    %c0_4 = arith.constant 0 : index
    %1 = vector.load %arg2[%c0_2, %c0_3, %c0_4] : memref<1x8x128xf32, #tpu.memory_space<vmem>>, vector<1x8x128xf32>
    %2 = arith.negf %0 : vector<1x8x128xf32>
    %3 = math.exp %2 : vector<1x8x128xf32>
    %cst = arith.constant 1.000000e+00 : f32
    %4 = vector.broadcast %cst : f32 to vector<1x8x128xf32>
    %5 = arith.addf %4, %3 : vector<1x8x128xf32>
    %6 = arith.divf %4, %5 : vector<1x8x128xf32>
    %cst_5 = arith.constant 0.000000e+00 : f32
    %7 = vector.broadcast %cst_5 : f32 to vector<1x8x128xf32>
    %8 = arith.maximumf %0, %7 : vector<1x8x128xf32>
    %9 = arith.mulf %0, %1 : vector<1x8x128xf32>
    %10 = arith.subf %8, %9 : vector<1x8x128xf32>
    %cst_6 = arith.constant 1.000000e+00 : f32
    %11 = vector.broadcast %cst_6 : f32 to vector<1x8x128xf32>
    %12 = arith.subf %11, %6 : vector<1x8x128xf32>
    %13 = arith.maximumf %6, %12 : vector<1x8x128xf32>
    %14 = math.log %13 : vector<1x8x128xf32>
    %15 = arith.subf %10, %14 : vector<1x8x128xf32>
    %cst_7 = arith.constant 1.000000e+00 : f32
    %16 = vector.broadcast %cst_7 : f32 to vector<1x8x128xf32>
    %17 = arith.cmpf oeq, %1, %16 : vector<1x8x128xf32>
    %cst_8 = arith.constant 1.000000e+00 : f32
    %18 = vector.broadcast %cst_8 : f32 to vector<1x8x128xf32>
    %19 = arith.subf %18, %6 : vector<1x8x128xf32>
    %20 = arith.select %17, %6, %19 : vector<1x8x128xi1>, vector<1x8x128xf32>
    %cst_9 = arith.constant 1.000000e+00 : f32
    %21 = vector.broadcast %cst_9 : f32 to vector<1x8x128xf32>
    %22 = arith.subf %21, %20 : vector<1x8x128xf32>
    %23 = arith.mulf %22, %22 : vector<1x8x128xf32>
    %cst_10 = arith.constant 1.000000e+00 : f32
    %24 = vector.broadcast %cst_10 : f32 to vector<1x8x128xf32>
    %25 = arith.cmpf oeq, %1, %24 : vector<1x8x128xf32>
    %cst_11 = arith.constant 2.500000e-01 : f32
    %cst_12 = arith.constant 7.500000e-01 : f32
    %26 = vector.broadcast %cst_11 : f32 to vector<1x8x128xf32>
    %27 = vector.broadcast %cst_12 : f32 to vector<1x8x128xf32>
    %28 = arith.select %25, %26, %27 : vector<1x8x128xi1>, vector<1x8x128xf32>
    %29 = arith.mulf %28, %23 : vector<1x8x128xf32>
    %30 = arith.mulf %29, %15 : vector<1x8x128xf32>
    %c1024_i32 = arith.constant 1024 : i32
    %31 = arith.muli %arg0, %c1024_i32 : i32
    %32 = tpu.iota {dimensions = array<i32: 0>} : vector<1x8x128xi32>
    %33 = tpu.iota {dimensions = array<i32: 1>} : vector<1x8x128xi32>
    %34 = tpu.iota {dimensions = array<i32: 2>} : vector<1x8x128xi32>
    %c1024_i32_13 = arith.constant 1024 : i32
    %35 = vector.broadcast %c1024_i32_13 : i32 to vector<1x8x128xi32>
    %36 = arith.muli %32, %35 : vector<1x8x128xi32>
    %37 = vector.broadcast %31 : i32 to vector<1x8x128xi32>
    %38 = arith.addi %37, %36 : vector<1x8x128xi32>
    %c128_i32 = arith.constant 128 : i32
    %39 = vector.broadcast %c128_i32 : i32 to vector<1x8x128xi32>
    %40 = arith.muli %33, %39 : vector<1x8x128xi32>
    %41 = arith.addi %38, %40 : vector<1x8x128xi32>
    %42 = arith.addi %41, %34 : vector<1x8x128xi32>
    %c512_i32 = arith.constant 512 : i32
    %43 = vector.broadcast %c512_i32 : i32 to vector<1x8x128xi32>
    %44 = arith.cmpi slt, %42, %43 : vector<1x8x128xi32>
    %cst_14 = arith.constant 0.000000e+00 : f32
    %45 = vector.broadcast %cst_14 : f32 to vector<1x8x128xf32>
    %46 = arith.select %44, %30, %45 : vector<1x8x128xi1>, vector<1x8x128xf32>
    %cst_15 = arith.constant dense<0.000000e+00> : vector<8x128xf32>
    %47 = vector.multi_reduction <add>, %46, %cst_15 [0] : vector<1x8x128xf32> to vector<8x128xf32>
    %c0_16 = arith.constant 0 : index
    %c0_17 = arith.constant 0 : index
    %c0_18 = arith.constant 0 : index
    %48 = vector.load %arg3[%c0_16, %c0_17, %c0_18] : memref<1x8x128xf32, #tpu.memory_space<vmem>>, vector<1x8x128xf32>
    %49 = vector.shape_cast %48 : vector<1x8x128xf32> to vector<8x128xf32>
    %50 = vector.shape_cast %47 : vector<8x128xf32> to vector<1x8x128xf32>
    tpu.vector_store %arg3[%c0_16, %c0_17, %c0_18], %50 {strides = array<i32>} : memref<1x8x128xf32, #tpu.memory_space<vmem>>, vector<1x8x128xf32>,
    return
  }
  func.func @transform_0(%arg0: i32) -> (i32, i32, i32) {
    %c0_i32 = arith.constant 0 : i32
    %c0_i32_0 = arith.constant 0 : i32
    %c0_i32_1 = arith.constant 0 : i32
    return %arg0, %c0_i32, %c0_i32_0 : i32, i32, i32
  }
  func.func @transform_1(%arg0: i32) -> (i32, i32, i32) {
    %c0_i32 = arith.constant 0 : i32
    %c0_i32_0 = arith.constant 0 : i32
    %c0_i32_1 = arith.constant 0 : i32
    return %arg0, %c0_i32, %c0_i32_0 : i32, i32, i32
  }
  func.func @transform_2(%arg0: i32) -> (i32, i32, i32) {
    %c0_i32 = arith.constant 0 : i32
    %c0_i32_0 = arith.constant 0 : i32
    %c0_i32_1 = arith.constant 0 : i32
    return %arg0, %c0_i32, %c0_i32_0 : i32, i32, i32
  }
}

</mosaic_0001>

<bundles_post_ra>
// kernel: tpu_custom_call.1
= control target key start
LH: loop header
LB: loop body
LE: loop exit
PB: predicated region body
PF: predicated region fallthrough
CT: control target
= control target key end

     0   :  { %7 = vsyncpa [#allocation3], 0  ;;  %s224_s0 = inlined_call_operand.hbm [shape: f32[1,8,128], index: 0, kind: input, shape index: {}]   ;;  %s225_s1 = inlined_call_operand.hbm [shape: f32[1,8,128], index: 1, kind: input, shape index: {}]   ;;  %s226_s2 = inlined_call_operand.hbm [shape: f32[1,8,128], index: 2, kind: output, shape index: {}]  }
   0x1   :  { %8 = vsyncpa [#allocation6], 0 }
   0x2   :  { %9 = vsyncpa [#allocation4], 0  ;;  %s15_s11 = sshll.u32 %s224_s0, 4  ;;  %s196_s12 = smov [#allocation2]   ;;  %s16_s11 = int_to_ptr.hbm [resolvable:$true] %s15_s11 }
   0x3   :  { %s17_s13 = sshll.u32 %s196_s12, 4  ;;  %s26_s16 = sshll.u32 %s225_s1, 4  ;;  %s18_s13 = int_to_ptr.vmem [resolvable:$true] %s17_s13  ;;  %s27_s16 = int_to_ptr.hbm [resolvable:$true] %s26_s16 }
   0x4   :  { %20 = dma.hbm_to_vmem [thread:$0]  %s16_s11, 128, %s18_s13, [#allocation3]  }
   0x5   :  { %s197_s17 = smov [#allocation5]  }
   0x6   :  { %s28_s18 = sshll.u32 %s197_s17, 4  ;;  %s29_s18 = int_to_ptr.vmem [resolvable:$true] %s28_s18 }
   0x7   :  { %31 = dma.hbm_to_vmem [thread:$0]  %s27_s16, 128, %s29_s18, [#allocation6]  }
   0x8   :  { %190 = dma.done.wait [#allocation3], 128  }
   0x9   :  { %191 = vsyncadd [#allocation3], 4294967168 }
   0xa   :  { %192 = dma.done.wait [#allocation6], 128  }
   0xb   :  { %193 = vsyncadd [#allocation6], 4294967168  ;;  %v40_v0 = vld [vmem:[#allocation2] sm:$0xff]  ;;  %v41_v11 = vld [vmem:[#allocation5] sm:$0xff]  ;;  %v77_v14 = vlaneseq  ;;  %v198_v26 = vmov 0.75   ;;  %s199_s0 = smov [#allocation7]  }
   0xc   :  { %v107_v1 = vmul.f32 -1.442695, %v40_v0  ;;  %vm69_vm4 = vcmp.eq.f32.partialorder %v41_v11, 1.0  ;;  %v61_v21 = vmax.f32 %v40_v0, 0.0  ;;  %v62_v22 = vmul.f32 %v41_v11, %v40_v0  ;;  %s94_s1 = sshll.u32 %s199_s0, 4  ;;  %s96_s21 = sshll.u32 %s226_s2, 4  ;;  %s95_s1 = int_to_ptr.vmem [resolvable:$true] %s94_s1  ;;  %s97_s21 = int_to_ptr.hbm [resolvable:$true] %s96_s21 }
   0xd   :  { %v78_v19 = vshrl.u32 %v77_v14, 7  ;;  %v80_v23 = vand.u32 127, %v77_v14  ;;  %v73_v27 = vsel %vm69_vm4, 0.25, %v198_v26 }
   0xe   :  { %112 = vpow2.f32 %v107_v1  ;;  %v63_v28 = vsub.f32 %v61_v21, %v62_v22 }
   0xf   :  { %v82_v24 = vmul.u32 128, %v78_v19 }
  0x11   :  { %v84_v30 = vadd.s32 %v82_v24, %v80_v23 }
  0x13   :  { %vm85_vm5 = vcmp.lt.s32.totalorder %v84_v30, 512 }
  0x14   :  { %v113_v2 = vpop.eup %112 }
  0x15   :  { %v45_v3 = vadd.f32 1.0, %v113_v2 }
  0x17   :  { %114 = vrcp.f32 %v45_v3  ;;  %v57_v6 = vand.u32 2147483648, %v45_v3  ;;  %vm51_vm0 = vweird.f32 %v45_v3  ;;  %v55_v8 = vand.u32 2147483647, %v45_v3 }
  0x19   :  { %v58_v10 = vor.u32 1.1754944e-38, %v57_v6  ;;  %vm56_vm3 = vcmp.eq.f32.partialorder %v55_v8, 8.507059e+37 }
  0x1d   :  { %v115_v4 = vpop.eup %114 }
  0x1e   :  { %v47_v5 = vmul.f32 %v115_v4, %v45_v3  ;;  %vm52_vm1 = vweird.f32 %v115_v4 }
  0x1f   :  { %vm53_vm2 = vmor %vm51_vm0, %vm52_vm1 }
  0x20   :  { %v48_v7 = vsub.f32 1.0, %v47_v5 }
  0x22   :  { %v49_v9 = vmul.f32 %v115_v4, %v48_v7 }
  0x24   :  { %v50_v12 = vadd.f32 %v115_v4, %v49_v9 }
  0x26   :  { %v54_v13 = vsel %vm53_vm2, %v115_v4, %v50_v12 }
  0x27   :  { %v59_v15 = vsel %vm56_vm3, %v58_v10, %v54_v13 }
  0x28   :  { %v64_v16 = vsub.f32 1.0, %v59_v15 }
  0x2a   :  { %v65_v17 = vmax.f32 %v59_v15, %v64_v16  ;;  %v70_v18 = vsel %vm69_vm4, %v59_v15, %v64_v16 }
  0x2b   :  { %v71_v20 = vsub.f32 1.0, %v70_v18 }
  0x2c   :  { %116 = vlog2.f32 %v65_v17 }
  0x2d   :  { %v72_v25 = vmul.f32 %v71_v20, %v71_v20 }
  0x2f   :  { %v74_v32 = vmul.f32 %v73_v27, %v72_v25 }
  0x32   :  { %v117_v29 = vpop.eup %116 }
  0x33   :  { %v67_v31 = vmul.f32 0.6931472, %v117_v29 }
  0x35   :  { %v68_v33 = vsub.f32 %v63_v28, %v67_v31 }
  0x37   :  { %v75_v34 = vmul.f32 %v74_v32, %v68_v33 }
  0x39   :  { %v86_v35 = vsel %vm85_vm5, %v75_v34, 0.0 }
  0x3a   :  { %88 = vst [vmem:[#allocation7] sm:$0xff] %v86_v35 }
  0x3b   :  { %99 = dma.vmem_to_hbm [thread:$0]  %s95_s1, 128, %s97_s21, [#allocation4]  }
  0x3c   :  { %194 = dma.done.wait [#allocation4], 128  }
  0x3d   :  { %195 = vsyncadd [#allocation4], 4294967168 }
  0x3e   :  { %104 = vsyncpa [#allocation3], 1 }
  0x3f   :  { %105 = vsyncpa [#allocation6], 1 }
  0x40   :  { %106 = vsyncpa [#allocation4], 1 }

</bundles_post_ra>
